<compile_context>
chip_gen: v5e
topology: v5e:2x2
jax: 0.10.0
libtpu: 0.0.40
codegen_flags: <defaults>
</compile_context>

<pallas_src>
import jax
import jax.numpy as jnp
from jax.experimental import pallas as pl
from jax.experimental.pallas import tpu as pltpu


# ----------------------------- constants ------------------------------------

_LANES = 512        # lane-dense slab width (multiple of 128, unmasked vst)
_MAX_TILE_R = 1024  # 1024 x 512 f32 = 2 MiB per block -> safe on v7x VMEM


def _round_up(n, m):
    return -(-n // m) * m


# ----------------------------- kernels --------------------------------------

def _calc_xt_kernel(coef_ref, x0_ref, x1_ref, z_ref, xt_ref):
    """x_t = a*x0 + b*x1 + gamma*z  (linear path, brownian gamma).

    coef_ref (SMEM, shape (3,)) holds [a, b, gamma] precomputed in the wrapper.
    """
    a = coef_ref[0]
    b = coef_ref[1]
    g = coef_ref[2]
    xt_ref[...] = a * x0_ref[...] + b * x1_ref[...] + g * z_ref[...]


def _antithetic_kernel(coef_ref, x0_ref, x1_ref, z_ref, itp_ref, itm_ref):
    """It +/- gamma*z in one pass (shares a*x0+b*x1 and gamma*z)."""
    a = coef_ref[0]
    b = coef_ref[1]
    g = coef_ref[2]
    it = a * x0_ref[...] + b * x1_ref[...]
    gz = g * z_ref[...]
    itp_ref[...] = it + gz
    itm_ref[...] = it - gz


# ----------------------------- wrappers -------------------------------------

def _coefs(t):
    """Hoisted scalar math: [a(t), b(t), gamma(t)] as a 3-vector for SMEM."""
    t = jnp.asarray(t, jnp.float32)
    a = 1.0 - t
    b = t
    g = jnp.sqrt(t * (1.0 - t))
    return jnp.stack([a, b, g]).astype(jnp.float32)


def _slab_params(n_elems):
    """Padded slab row count and row-tile size for n_elems flat elements."""
    rows = _round_up(n_elems, _LANES) // _LANES
    tile_r = min(_MAX_TILE_R, _round_up(rows, 8))   # (8,128)-rule safe
    rows_p = _round_up(rows, tile_r)
    return rows_p, tile_r


def _to_slab(x, rows_p):
    """Flatten to a lane-dense (rows_p, _LANES) slab, zero-padding the tail."""
    flat = x.reshape(-1)
    pad = rows_p * _LANES - flat.size
    if pad:
        flat = jnp.pad(flat, (0, pad))
    return flat.reshape(rows_p, _LANES)


def _from_slab(slab, orig):
    return slab.reshape(-1)[: orig.size].reshape(orig.shape)


def _row_block_spec(tile_r):
    return pl.BlockSpec((tile_r, _LANES), lambda i: (i, 0))


def _compiler_params():
    # Row-tile axis is fully independent -> both v7x TensorCores take halves.
    return pltpu.CompilerParams(dimension_semantics=("parallel",))


def calc_xt(t, x0, x1, z):
    """Pallas version of Interpolant.calc_xt (linear/brownian). Returns (xt, z)."""
    rows_p, tile_r = _slab_params(x0.size)
    x0s, x1s, zs = _to_slab(x0, rows_p), _to_slab(x1, rows_p), _to_slab(z, rows_p)
    coef = _coefs(t)

    xt_slab = pl.pallas_call(
        _calc_xt_kernel,
        out_shape=jax.ShapeDtypeStruct((rows_p, _LANES), x0.dtype),
        grid=(rows_p // tile_r,),
        in_specs=[
            pl.BlockSpec(memory_space=pltpu.SMEM),   # [a, b, gamma]
            _row_block_spec(tile_r),                 # x0
            _row_block_spec(tile_r),                 # x1
            _row_block_spec(tile_r),                 # z
        ],
        out_specs=_row_block_spec(tile_r),
        compiler_params=_compiler_params(),
    )(coef, x0s, x1s, zs)
    return _from_slab(xt_slab, x0), z


def calc_antithetic_xts(t, x0, x1, z):
    """Pallas version of Interpolant.calc_antithetic_xts. Returns (It+gz, It-gz, z)."""
    rows_p, tile_r = _slab_params(x0.size)
    x0s, x1s, zs = _to_slab(x0, rows_p), _to_slab(x1, rows_p), _to_slab(z, rows_p)
    coef = _coefs(t)

    itp_slab, itm_slab = pl.pallas_call(
        _antithetic_kernel,
        out_shape=(
            jax.ShapeDtypeStruct((rows_p, _LANES), x0.dtype),
            jax.ShapeDtypeStruct((rows_p, _LANES), x0.dtype),
        ),
        grid=(rows_p // tile_r,),
        in_specs=[
            pl.BlockSpec(memory_space=pltpu.SMEM),
            _row_block_spec(tile_r),
            _row_block_spec(tile_r),
            _row_block_spec(tile_r),
        ],
        out_specs=(
            _row_block_spec(tile_r),
            _row_block_spec(tile_r),
        ),
        compiler_params=_compiler_params(),
    )(coef, x0s, x1s, zs)
    return _from_slab(itp_slab, x0), _from_slab(itm_slab, x0), z


def calc_xt_and_antithetic_xts(t, x0, x1, z):
    """Fused path: when both calc_xt and calc_antithetic_xts are needed.

    xt == It + gamma*z == itp exactly, so a single antithetic pass supplies
    all three tensors and x0/x1/z are read from HBM only once.
    Returns (xt, itp, itm, z).
    """
    itp, itm, z = calc_antithetic_xts(t, x0, x1, z)
    return itp, itp, itm, z


# ------------------------------ main ----------------------------------------

if __name__ == "__main__":
    key = jax.random.PRNGKey(0)
    k0, k1, kz = jax.random.split(key, 3)

    # NCHW, 2*4*16*16 = 2048 elements.
    B, C, H, W = 2, 4, 16, 16
    x0 = jax.random.normal(k0, (B, C, H, W), dtype=jnp.float32)
    x1 = jax.random.normal(k1, (B, C, H, W), dtype=jnp.float32)
    z = jax.random.normal(kz, (B, C, H, W), dtype=jnp.float32)
    t = jnp.float32(0.3)

    xt, z_out = calc_xt(t, x0, x1, z)
    itp, itm, _ = calc_antithetic_xts(t, x0, x1, z)
    xt_f, itp_f, itm_f, _ = calc_xt_and_antithetic_xts(t, x0, x1, z)
    jax.block_until_ready((xt, itp, itm, xt_f, itp_f, itm_f))

    # reference (plain JAX, same math as the torch fabrics for linear/brownian)
    a = 1.0 - t
    b = t
    gamma = jnp.sqrt(t * (1.0 - t))
    xt_ref = a * x0 + b * x1 + gamma * z
    itm_ref = a * x0 + b * x1 - gamma * z

    assert xt.shape == (B, C, H, W) and xt.dtype == jnp.float32
    assert jnp.allclose(xt, xt_ref, atol=1e-6)
    assert jnp.allclose(itp, xt_ref, atol=1e-6)
    assert jnp.allclose(itm, itm_ref, atol=1e-6)
    assert jnp.allclose(xt_f, xt_ref, atol=1e-6)
    assert jnp.allclose(itp_f, xt_ref, atol=1e-6)
    assert jnp.allclose(itm_f, itm_ref, atol=1e-6)

    # Also exercise the padding path (size not a multiple of 128).
    B2, C2, H2, W2 = 2, 3, 10, 10      # 600 elements
    x0b = jax.random.normal(k0, (B2, C2, H2, W2), dtype=jnp.float32)
    x1b = jax.random.normal(k1, (B2, C2, H2, W2), dtype=jnp.float32)
    zb = jax.random.normal(kz, (B2, C2, H2, W2), dtype=jnp.float32)
    xtb, _ = calc_xt(t, x0b, x1b, zb)
    itpb, itmb, _ = calc_antithetic_xts(t, x0b, x1b, zb)
    jax.block_until_ready((xtb, itpb, itmb))
    assert jnp.allclose(xtb, a * x0b + b * x1b + gamma * zb, atol=1e-6)
    assert jnp.allclose(itpb, a * x0b + b * x1b + gamma * zb, atol=1e-6)
    assert jnp.allclose(itmb, a * x0b + b * x1b - gamma * zb, atol=1e-6)

    print("KERNEL_OK")
</pallas_src>

<mosaic_0001>
module attributes {stable_mosaic.version = 11 : i64} {
  func.func @_calc_xt_kernel(%arg0: i32, %arg1: memref<3xf32, #tpu.memory_space<smem>>, %arg2: memref<8x512xf32, #tpu.memory_space<vmem>>, %arg3: memref<8x512xf32, #tpu.memory_space<vmem>>, %arg4: memref<8x512xf32, #tpu.memory_space<vmem>>, %arg5: memref<8x512xf32, #tpu.memory_space<vmem>>) attributes {dimension_semantics = [#tpu.dimension_semantics<parallel>], iteration_bounds = array<i64: 1>, scalar_prefetch = 0 : i64, scratch_operands = 0 : i64, tpu.core_type = #tpu.core_type<tc>, window_params = [{transform_indices = @transform_0, window_bounds = array<i64: 3>}, {transform_indices = @transform_1, window_bounds = array<i64: 8, 512>}, {transform_indices = @transform_2, window_bounds = array<i64: 8, 512>}, {transform_indices = @transform_3, window_bounds = array<i64: 8, 512>}, {transform_indices = @transform_4, window_bounds = array<i64: 8, 512>}]} {
    %c0 = arith.constant 0 : index
    %0 = memref.load %arg1[%c0] : memref<3xf32, #tpu.memory_space<smem>>
    %c1 = arith.constant 1 : index
    %1 = memref.load %arg1[%c1] : memref<3xf32, #tpu.memory_space<smem>>
    %c2 = arith.constant 2 : index
    %2 = memref.load %arg1[%c2] : memref<3xf32, #tpu.memory_space<smem>>
    %c0_0 = arith.constant 0 : index
    %c0_1 = arith.constant 0 : index
    %3 = vector.load %arg2[%c0_0, %c0_1] : memref<8x512xf32, #tpu.memory_space<vmem>>, vector<8x512xf32>
    %4 = vector.broadcast %0 : f32 to vector<8x512xf32>
    %5 = arith.mulf %4, %3 : vector<8x512xf32>
    %c0_2 = arith.constant 0 : index
    %c0_3 = arith.constant 0 : index
    %6 = vector.load %arg3[%c0_2, %c0_3] : memref<8x512xf32, #tpu.memory_space<vmem>>, vector<8x512xf32>
    %7 = vector.broadcast %1 : f32 to vector<8x512xf32>
    %8 = arith.mulf %7, %6 : vector<8x512xf32>
    %9 = arith.addf %5, %8 : vector<8x512xf32>
    %c0_4 = arith.constant 0 : index
    %c0_5 = arith.constant 0 : index
    %10 = vector.load %arg4[%c0_4, %c0_5] : memref<8x512xf32, #tpu.memory_space<vmem>>, vector<8x512xf32>
    %11 = vector.broadcast %2 : f32 to vector<8x512xf32>
    %12 = arith.mulf %11, %10 : vector<8x512xf32>
    %13 = arith.addf %9, %12 : vector<8x512xf32>
    %c0_6 = arith.constant 0 : index
    %c0_7 = arith.constant 0 : index
    %14 = vector.load %arg5[%c0_6, %c0_7] : memref<8x512xf32, #tpu.memory_space<vmem>>, vector<8x512xf32>
    tpu.vector_store %arg5[%c0_6, %c0_7], %13 {strides = array<i32>} : memref<8x512xf32, #tpu.memory_space<vmem>>, vector<8x512xf32>,
    return
  }
  func.func @transform_0(%arg0: i32) -> i32 {
    %c0_i32 = arith.constant 0 : i32
    %c0_i32_0 = arith.constant 0 : i32
    return %c0_i32 : i32
  }
  func.func @transform_1(%arg0: i32) -> (i32, i32) {
    %c0_i32 = arith.constant 0 : i32
    %c0_i32_0 = arith.constant 0 : i32
    return %arg0, %c0_i32 : i32, i32
  }
  func.func @transform_2(%arg0: i32) -> (i32, i32) {
    %c0_i32 = arith.constant 0 : i32
    %c0_i32_0 = arith.constant 0 : i32
    return %arg0, %c0_i32 : i32, i32
  }
  func.func @transform_3(%arg0: i32) -> (i32, i32) {
    %c0_i32 = arith.constant 0 : i32
    %c0_i32_0 = arith.constant 0 : i32
    return %arg0, %c0_i32 : i32, i32
  }
  func.func @transform_4(%arg0: i32) -> (i32, i32) {
    %c0_i32 = arith.constant 0 : i32
    %c0_i32_0 = arith.constant 0 : i32
    return %arg0, %c0_i32 : i32, i32
  }
}

</mosaic_0001>

<bundles_post_ra>
// kernel: tpu_custom_call.1
= control target key start
LH: loop header
LB: loop body
LE: loop exit
PB: predicated region body
PF: predicated region fallthrough
CT: control target
= control target key end

     0   :  { %9 = vsyncpa [#allocation5], 0  ;;  %s301_s0 = inlined_call_operand.hbm [shape: f32[3], index: 0, kind: input, shape index: {}]   ;;  %s302_s1 = inlined_call_operand.hbm [shape: f32[8,512], index: 1, kind: input, shape index: {}]   ;;  %s303_s2 = inlined_call_operand.hbm [shape: f32[8,512], index: 2, kind: input, shape index: {}]   ;;  %s304_s3 = inlined_call_operand.hbm [shape: f32[8,512], index: 3, kind: input, shape index: {}]   ;;  %s305_s4 = inlined_call_operand.hbm [shape: f32[8,512], index: 4, kind: output, shape index: {}]  }
   0x1   :  { %10 = vsyncpa [#allocation3], 0 }
   0x2   :  { %11 = vsyncpa [#allocation8], 0  ;;  %s38_s17 = sshll.u32 %s303_s2, 4  ;;  %s39_s17 = int_to_ptr.hbm [resolvable:$true] %s38_s17 }
   0x3   :  { %12 = vsyncpa [#allocation4], 0  ;;  %s256_s18 = smov [#allocation7]   ;;  %s18_s22 = sshll.u32 %s301_s0, 4  ;;  %s19_s22 = int_to_ptr.hbm [resolvable:$true] %s18_s22 }
   0x4   :  { %s40_s19 = sshll.u32 %s256_s18, 4  ;;  %s257_s23 = smov [#allocation2]   ;;  %s41_s19 = int_to_ptr.vmem [resolvable:$true] %s40_s19 }
   0x5   :  { %43 = dma.hbm_to_vmem [thread:$0]  %s39_s17, 512, %s41_s19, [#allocation8]  }
   0x6   :  { %21 = dma.hbm_to_smem %s19_s22, 16, %s257_s23, [#allocation5]  }
   0x7   :  { %s27_s26 = sshll.u32 %s302_s1, 4  ;;  %s258_s27 = smov [#allocation6]   ;;  %s28_s26 = int_to_ptr.hbm [resolvable:$true] %s27_s26 }
   0x8   :  { %s29_s2 = sshll.u32 %s258_s27, 4  ;;  %s49_s30 = sshll.u32 %s304_s3, 4  ;;  %s30_s2 = int_to_ptr.vmem [resolvable:$true] %s29_s2  ;;  %s50_s30 = int_to_ptr.hbm [resolvable:$true] %s49_s30 }
   0x9   :  { %32 = dma.hbm_to_vmem [thread:$0]  %s28_s26, 512, %s30_s2, [#allocation3]  }
   0xa   :  { %s259_s5 = smov [#allocation9]  }
   0xb   :  { %s51_s0 = sshll.u32 %s259_s5, 4  ;;  %s52_s0 = int_to_ptr.vmem [resolvable:$true] %s51_s0 }
   0xc   :  { %54 = dma.hbm_to_vmem [thread:$0]  %s50_s30, 512, %s52_s0, [#allocation8]  }
   0xd   :  { %248 = dma.done.wait [#allocation5], 16  }
   0xe   :  { %249 = vsyncadd [#allocation5], 4294967280 }
   0xf   :  { %250 = dma.done.wait [#allocation3], 512  }
  0x10   :  { %251 = vsyncadd [#allocation3], 4294966784 }
  0x11   :  { %252 = dma.done.wait [#allocation8], 1024  }
  0x12   :  { %253 = vsyncadd [#allocation8], 4294966272 }
  0x13   :  { %71 = sfence }
  0x14   :  { %s72_s1 = sld [smem:[#allocation2]]  ;;  %v75_v0 = vld [vmem:[#allocation6] sm:$0xff]  ;;  %v76_v2 = vld [vmem:[#allocation6 + $0x8] sm:$0xff]  ;;  %v77_v3 = vld [vmem:[#allocation6 + $0x10] sm:$0xff]  ;;  %s260_s3 = smov [#allocation10]  }
  0x15   :  { %s133_s6 = sld [smem:[#allocation2 + $0x1]]  ;;  %v84_v1 = vld [vmem:[#allocation7] sm:$0xff]  ;;  %v85_v5 = vld [vmem:[#allocation7 + $0x8] sm:$0xff]  ;;  %v86_v6 = vld [vmem:[#allocation7 + $0x10] sm:$0xff]  ;;  %s119_s8 = sshll.u32 %s260_s3, 4  ;;  %s120_s8 = int_to_ptr.vmem [resolvable:$true] %s119_s8 }
  0x16   :  { %s134_s7 = sld [smem:[#allocation2 + $0x2]]  ;;  %v97_v4 = vld [vmem:[#allocation9] sm:$0xff]  ;;  %v98_v8 = vld [vmem:[#allocation9 + $0x8] sm:$0xff]  ;;  %v99_v9 = vld [vmem:[#allocation9 + $0x10] sm:$0xff]  ;;  %s121_s11 = sshll.u32 %s305_s4, 4  ;;  %s122_s11 = int_to_ptr.hbm [resolvable:$true] %s121_s11 }
  0x17   :  { %v78_v10 = vld [vmem:[#allocation6 + $0x18] sm:$0xff] }
  0x18   :  { %v87_v15 = vld [vmem:[#allocation7 + $0x18] sm:$0xff] }
  0x19   :  { %v100_v20 = vld [vmem:[#allocation9 + $0x18] sm:$0xff] }
  0x1a   :  { %v79_v7 = vstv %s72_s1 }
  0x1b   :  { %v80_v11 = vmul.f32 %v79_v7, %v75_v0  ;;  %v88_v12 = vstv %s133_s6  ;;  %v81_v13 = vmul.f32 %v79_v7, %v76_v2  ;;  %v82_v14 = vmul.f32 %v79_v7, %v77_v3 }
  0x1c   :  { %v89_v16 = vmul.f32 %v88_v12, %v84_v1  ;;  %v101_v17 = vstv %s134_s7  ;;  %v90_v18 = vmul.f32 %v88_v12, %v85_v5  ;;  %v91_v19 = vmul.f32 %v88_v12, %v86_v6 }
  0x1d   :  { %v102_v21 = vmul.f32 %v101_v17, %v97_v4  ;;  %v103_v22 = vmul.f32 %v101_v17, %v98_v8  ;;  %v104_v23 = vmul.f32 %v101_v17, %v99_v9  ;;  %v83_v24 = vmul.f32 %v79_v7, %v78_v10 }
  0x1e   :  { %v93_v25 = vadd.f32 %v89_v16, %v80_v11  ;;  %v94_v26 = vadd.f32 %v90_v18, %v81_v13  ;;  %v95_v27 = vadd.f32 %v91_v19, %v82_v14  ;;  %v92_v28 = vmul.f32 %v88_v12, %v87_v15 }
  0x1f   :  { %v105_v29 = vmul.f32 %v101_v17, %v100_v20 }
  0x20   :  { %v106_v30 = vadd.f32 %v102_v21, %v93_v25  ;;  %v107_v31 = vadd.f32 %v103_v22, %v94_v26  ;;  %v108_v32 = vadd.f32 %v104_v23, %v95_v27  ;;  %v96_v33 = vadd.f32 %v92_v28, %v83_v24 }
  0x22   :  { %110 = vst [vmem:[#allocation10] sm:$0xff] %v106_v30  ;;  %v109_v34 = vadd.f32 %v105_v29, %v96_v33 }
  0x23   :  { %111 = vst [vmem:[#allocation10 + $0x8] sm:$0xff] %v107_v31 }
  0x24   :  { %112 = vst [vmem:[#allocation10 + $0x10] sm:$0xff] %v108_v32 }
  0x25   :  { %113 = vst [vmem:[#allocation10 + $0x18] sm:$0xff] %v109_v34 }
  0x26   :  { %124 = dma.vmem_to_hbm [thread:$0]  %s120_s8, 512, %s122_s11, [#allocation4]  }
  0x27   :  { %254 = dma.done.wait [#allocation4], 512  }
  0x28   :  { %255 = vsyncadd [#allocation4], 4294966784 }
  0x29   :  { %129 = vsyncpa [#allocation3], 1 }
  0x2a   :  { %130 = vsyncpa [#allocation8], 1 }
  0x2b   :  { %131 = vsyncpa [#allocation4], 1 }
  0x2c   :  { %132 = vsyncpa [#allocation5], 1 }

</bundles_post_ra>
